<compile_context>
chip_gen: v7x
topology: tpu7x:2x2x1
jax: 0.10.0
libtpu: 0.0.40
codegen_flags: <defaults>
</compile_context>

<pallas_src>
import math
import functools

import numpy as np
import jax
import jax.numpy as jnp
from jax.experimental import pallas as pl
from jax.experimental.pallas import tpu as pltpu


def _time_embedding_kernel(dim, t_ref, aux_ref, w1_ref, w2_ref, out_ref):
    """Fused sinusoidal embedding -> Linear -> SiLU -> Linear.

    t_ref   : [bm, 1]       f32  timestep block
    aux_ref : [4, 4*dim]    f32  row0 = freq (first dim cols), row1 = phase
                                 (0 for sin half, pi/2 for cos half),
                                 row2 = b1, row3 = b2 (first dim cols)
    w1_ref  : [dim, 4*dim]  bf16
    w2_ref  : [4*dim, dim]  bf16
    out_ref : [bm, dim]
    """
    t = t_ref[...]                                       # [bm, 1] f32
    freq = aux_ref[pl.ds(0, 1), pl.ds(0, dim)]           # [1, dim]
    phase = aux_ref[pl.ds(1, 1), pl.ds(0, dim)]          # [1, dim]
    b1 = aux_ref[pl.ds(2, 1), :]                         # [1, 4*dim]
    b2 = aux_ref[pl.ds(3, 1), pl.ds(0, dim)]             # [1, dim]

    # Sinusoidal embedding in one transcendental pass, no lane concat:
    #   cols [0, dim/2)   -> sin(t * f_j)
    #   cols [dim/2, dim) -> sin(t * f_j + pi/2) == cos(t * f_j)
    emb = jnp.sin(t * freq + phase)                      # [bm, dim] f32

    # linear1 -> SiLU -> linear2.  Both dots are bf16 x bf16 on the MXU with
    # f32 accumulation; bias add and SiLU stay in f32 (safe on v5e's VPU/EUP).
    h = jnp.dot(emb.astype(jnp.bfloat16), w1_ref[...],
                preferred_element_type=jnp.float32) + b1     # [bm, 4*dim] f32
    h = h * jax.nn.sigmoid(h)                                # SiLU (f32)
    y = jnp.dot(h.astype(jnp.bfloat16), w2_ref[...],
                preferred_element_type=jnp.float32) + b2     # [bm, dim] f32
    out_ref[...] = y.astype(out_ref.dtype)


def init_time_embedding_params(w1, b1, w2, b2, *, dim):
    """One-time parameter prep (do NOT call per forward pass).

    Returns bf16 weights and a packed f32 aux table [4, 4*dim]:
      row0 = sinusoid frequencies (first `dim` cols, repeated for sin/cos halves)
      row1 = phase (0 for sin half, pi/2 for cos half)
      row2 = b1, row3 = b2 (first `dim` cols)
    """
    assert dim % 2 == 0 and dim >= 4, "dim must be even and >= 4"
    half = dim // 2
    hidden = 4 * dim

    factor = math.log(10000.0) / (half - 1)
    freqs = np.exp(np.arange(half, dtype=np.float32) * np.float32(-factor))
    aux_np = np.zeros((4, hidden), dtype=np.float32)
    aux_np[0, :half] = freqs
    aux_np[0, half:dim] = freqs
    aux_np[1, half:dim] = np.float32(np.pi / 2.0)        # cos via sin(x + pi/2)
    aux = jnp.asarray(aux_np)
    aux = aux.at[2, :].set(jnp.asarray(b1, jnp.float32))
    aux = aux.at[3, :dim].set(jnp.asarray(b2, jnp.float32))

    return {
        "aux": aux,                                      # [4, 4*dim] f32
        "w1": jnp.asarray(w1, jnp.bfloat16),             # [dim, 4*dim]
        "w2": jnp.asarray(w2, jnp.bfloat16),             # [4*dim, dim]
    }


def time_embedding(time, params, *, dim, out_dtype=jnp.float32):
    """Pallas TimeEmbedding forward.

    time   : [B] timesteps
    params : dict from init_time_embedding_params (bf16 weights + f32 aux)
    returns: [B, dim] in out_dtype
    """
    B = time.shape[0]
    hidden = 4 * dim
    aux, w1_bf16, w2_bf16 = params["aux"], params["w1"], params["w2"]

    # Keep batch a multiple of 8 (f32 sublane granularity): pad, slice after.
    bm = 8
    b_pad = ((B + bm - 1) // bm) * bm
    time2d = time.reshape(B, 1).astype(jnp.float32)
    if b_pad != B:
        time2d = jnp.pad(time2d, ((0, b_pad - B), (0, 0)))
    grid = (b_pad // bm,)

    kernel = functools.partial(_time_embedding_kernel, dim)

    flops = 2 * b_pad * dim * hidden + 2 * b_pad * hidden * dim
    transcendentals = b_pad * dim + b_pad * hidden        # sin + sigmoid(exp)
    bytes_accessed = (time2d.size * 4 + aux.size * 4
                      + w1_bf16.size * 2 + w2_bf16.size * 2
                      + b_pad * dim * jnp.dtype(out_dtype).itemsize)

    # VMEM budget: weights/aux (x2 buffer headroom) + per-block activations.
    weight_bytes = (w1_bf16.size + w2_bf16.size) * 2 + aux.size * 4
    block_bytes = bm * (1 + dim + hidden + dim) * 4
    needed = 2 * weight_bytes + 4 * block_bytes + (1 << 20)
    vmem_limit = int(min(max(needed, 16 << 20), 100 << 20))

    return pl.pallas_call(
        kernel,
        out_shape=jax.ShapeDtypeStruct((b_pad, dim), out_dtype),
        grid=grid,
        in_specs=[
            pl.BlockSpec((bm, 1), lambda i: (i, 0)),          # time block
            pl.BlockSpec((4, hidden), lambda i: (0, 0)),      # aux (resident)
            pl.BlockSpec((dim, hidden), lambda i: (0, 0)),    # w1 bf16 (resident)
            pl.BlockSpec((hidden, dim), lambda i: (0, 0)),    # w2 bf16 (resident)
        ],
        out_specs=pl.BlockSpec((bm, dim), lambda i: (i, 0)),
        compiler_params=pltpu.CompilerParams(
            dimension_semantics=("parallel",),
            vmem_limit_bytes=vmem_limit,
        ),
        cost_estimate=pl.CostEstimate(
            flops=flops,
            transcendentals=transcendentals,
            bytes_accessed=bytes_accessed,
        ),
    )(time2d, aux, w1_bf16, w2_bf16)[:B]


def _reference(time, w1, b1, w2, b2, *, dim):
    """Pure-JAX f32 reference matching the PyTorch forward semantics."""
    half_dim = dim // 2
    factor = math.log(10000.0) / (half_dim - 1)
    freqs = jnp.exp(jnp.arange(half_dim, dtype=jnp.float32) * (-factor))
    ang = time[:, None] * freqs[None, :]
    emb = jnp.concatenate([jnp.sin(ang), jnp.cos(ang)], axis=-1)
    h = emb @ w1 + b1
    h = h * jax.nn.sigmoid(h)
    return h @ w2 + b2


if __name__ == "__main__":
    dim = 32
    batch = 8

    key = jax.random.PRNGKey(0)
    k_t, k_w1, k_b1, k_w2, k_b2 = jax.random.split(key, 5)

    time = jax.random.uniform(k_t, (batch,), jnp.float32, 0.0, 1000.0)

    lim1 = 1.0 / math.sqrt(dim)
    lim2 = 1.0 / math.sqrt(dim * 4)
    w1 = jax.random.uniform(k_w1, (dim, dim * 4), jnp.float32, -lim1, lim1)
    b1 = jax.random.uniform(k_b1, (dim * 4,), jnp.float32, -lim1, lim1)
    w2 = jax.random.uniform(k_w2, (dim * 4, dim), jnp.float32, -lim2, lim2)
    b2 = jax.random.uniform(k_b2, (dim,), jnp.float32, -lim2, lim2)

    # Prepare params ONCE (bf16 weights + packed aux); reuse across calls.
    params = init_time_embedding_params(w1, b1, w2, b2, dim=dim)

    out = time_embedding(time, params, dim=dim)
    out = jax.block_until_ready(out)

    ref = _reference(time, w1, b1, w2, b2, dtype := None or dim and None, dim=dim) if False else \
        _reference(time, w1, b1, w2, b2, dim=dim)
    assert out.shape == (batch, dim)
    # Tolerance loosened vs. a pure-f32 pipeline: both matmuls now run with
    # bf16 inputs (weights AND activations) and f32 accumulation.
    assert jnp.allclose(out, ref, atol=5e-2, rtol=5e-2), (
        f"max abs err {jnp.max(jnp.abs(out - ref))}"
    )
    print("KERNEL_OK")
</pallas_src>

<mosaic_0001>
module attributes {stable_mosaic.version = 11 : i64} {
  func.func @_time_embedding_kernel(%arg0: i32, %arg1: memref<8x1xf32, #tpu.memory_space<vmem>>, %arg2: memref<4x128xf32, #tpu.memory_space<vmem>>, %arg3: memref<32x128xbf16, #tpu.memory_space<vmem>>, %arg4: memref<128x32xbf16, #tpu.memory_space<vmem>>, %arg5: memref<8x32xf32, #tpu.memory_space<vmem>>) attributes {dimension_semantics = [#tpu.dimension_semantics<parallel>], iteration_bounds = array<i64: 1>, scalar_prefetch = 0 : i64, scratch_operands = 0 : i64, tpu.core_type = #tpu.core_type<tc>, window_params = [{transform_indices = @transform_0, window_bounds = array<i64: 8, 1>}, {pipeline_mode = #tpu.pipeline_mode<synchronous>, transform_indices = @transform_1, window_bounds = array<i64: 4, 128>}, {pipeline_mode = #tpu.pipeline_mode<synchronous>, transform_indices = @transform_2, window_bounds = array<i64: 32, 128>}, {pipeline_mode = #tpu.pipeline_mode<synchronous>, transform_indices = @transform_3, window_bounds = array<i64: 128, 32>}, {transform_indices = @transform_4, window_bounds = array<i64: 8, 32>}]} {
    %c0 = arith.constant 0 : index
    %c0_0 = arith.constant 0 : index
    %0 = vector.load %arg1[%c0, %c0_0] : memref<8x1xf32, #tpu.memory_space<vmem>>, vector<8x1xf32>
    %c0_1 = arith.constant 0 : index
    %c0_2 = arith.constant 0 : index
    %1 = vector.load %arg2[%c0_1, %c0_2] : memref<4x128xf32, #tpu.memory_space<vmem>>, vector<1x32xf32>
    %c1 = arith.constant 1 : index
    %c0_3 = arith.constant 0 : index
    %2 = vector.load %arg2[%c1, %c0_3] : memref<4x128xf32, #tpu.memory_space<vmem>>, vector<1x32xf32>
    %c2 = arith.constant 2 : index
    %c0_4 = arith.constant 0 : index
    %3 = vector.load %arg2[%c2, %c0_4] : memref<4x128xf32, #tpu.memory_space<vmem>>, vector<1x128xf32>
    %c3 = arith.constant 3 : index
    %c0_5 = arith.constant 0 : index
    %4 = vector.load %arg2[%c3, %c0_5] : memref<4x128xf32, #tpu.memory_space<vmem>>, vector<1x32xf32>
    %5 = vector.broadcast %0 : vector<8x1xf32> to vector<8x32xf32>
    %6 = vector.broadcast %1 : vector<1x32xf32> to vector<8x32xf32>
    %7 = arith.mulf %5, %6 : vector<8x32xf32>
    %8 = vector.broadcast %2 : vector<1x32xf32> to vector<8x32xf32>
    %9 = arith.addf %7, %8 : vector<8x32xf32>
    %10 = math.sin %9 : vector<8x32xf32>
    %11 = arith.truncf %10 : vector<8x32xf32> to vector<8x32xbf16>
    %c0_6 = arith.constant 0 : index
    %c0_7 = arith.constant 0 : index
    %12 = vector.load %arg3[%c0_6, %c0_7] : memref<32x128xbf16, #tpu.memory_space<vmem>>, vector<32x128xbf16>
    %cst = arith.constant dense<0.000000e+00> : vector<8x128xf32>
    %13 = tpu.matmul %11, %12, %cst {dimension_numbers = #tpu.dot_dimension_numbers<[1], [0], [0], [1], [0, 0, 1, 1], [], []>} : vector<8x32xbf16>, vector<32x128xbf16>, vector<8x128xf32> -> vector<8x128xf32>
    %14 = vector.broadcast %3 : vector<1x128xf32> to vector<8x128xf32>
    %15 = arith.addf %13, %14 : vector<8x128xf32>
    %16 = arith.negf %15 : vector<8x128xf32>
    %17 = math.exp %16 : vector<8x128xf32>
    %cst_8 = arith.constant 1.000000e+00 : f32
    %18 = vector.broadcast %cst_8 : f32 to vector<8x128xf32>
    %19 = arith.addf %18, %17 : vector<8x128xf32>
    %20 = arith.divf %18, %19 : vector<8x128xf32>
    %21 = arith.mulf %15, %20 : vector<8x128xf32>
    %22 = arith.truncf %21 : vector<8x128xf32> to vector<8x128xbf16>
    %c0_9 = arith.constant 0 : index
    %c0_10 = arith.constant 0 : index
    %23 = vector.load %arg4[%c0_9, %c0_10] : memref<128x32xbf16, #tpu.memory_space<vmem>>, vector<128x32xbf16>
    %cst_11 = arith.constant dense<0.000000e+00> : vector<8x32xf32>
    %24 = tpu.matmul %22, %23, %cst_11 {dimension_numbers = #tpu.dot_dimension_numbers<[1], [0], [0], [1], [0, 0, 1, 1], [], []>} : vector<8x128xbf16>, vector<128x32xbf16>, vector<8x32xf32> -> vector<8x32xf32>
    %25 = vector.broadcast %4 : vector<1x32xf32> to vector<8x32xf32>
    %26 = arith.addf %24, %25 : vector<8x32xf32>
    %c0_12 = arith.constant 0 : index
    %c0_13 = arith.constant 0 : index
    %27 = vector.load %arg5[%c0_12, %c0_13] : memref<8x32xf32, #tpu.memory_space<vmem>>, vector<8x32xf32>
    tpu.vector_store %arg5[%c0_12, %c0_13], %26 {strides = array<i32>} : memref<8x32xf32, #tpu.memory_space<vmem>>, vector<8x32xf32>,
    return
  }
  func.func @transform_0(%arg0: i32) -> (i32, i32) {
    %c0_i32 = arith.constant 0 : i32
    %c0_i32_0 = arith.constant 0 : i32
    return %arg0, %c0_i32 : i32, i32
  }
  func.func @transform_1(%arg0: i32) -> (i32, i32) {
    %c0_i32 = arith.constant 0 : i32
    %c0_i32_0 = arith.constant 0 : i32
    %c0_i32_1 = arith.constant 0 : i32
    return %c0_i32, %c0_i32_0 : i32, i32
  }
  func.func @transform_2(%arg0: i32) -> (i32, i32) {
    %c0_i32 = arith.constant 0 : i32
    %c0_i32_0 = arith.constant 0 : i32
    %c0_i32_1 = arith.constant 0 : i32
    return %c0_i32, %c0_i32_0 : i32, i32
  }
  func.func @transform_3(%arg0: i32) -> (i32, i32) {
    %c0_i32 = arith.constant 0 : i32
    %c0_i32_0 = arith.constant 0 : i32
    %c0_i32_1 = arith.constant 0 : i32
    return %c0_i32, %c0_i32_0 : i32, i32
  }
  func.func @transform_4(%arg0: i32) -> (i32, i32) {
    %c0_i32 = arith.constant 0 : i32
    %c0_i32_0 = arith.constant 0 : i32
    return %arg0, %c0_i32 : i32, i32
  }
}

</mosaic_0001>

<bundles_post_ra>
// kernel: tpu_custom_call.1
= control target key start
LH: loop header
LB: loop body
LE: loop exit
PB: predicated region body
PF: predicated region fallthrough
CT: control target
= control target key end

     0   :  { %v456_v1 = vmov 0   ;;  %s583_s0 = inlined_call_operand.vmem [shape: f32[8,1], index: 0, kind: input, shape index: {}]   ;;  %s584_s1 = inlined_call_operand.vmem [shape: f32[4,128], index: 1, kind: input, shape index: {}]   ;;  %s585_s2 = inlined_call_operand.vmem [shape: bf16[32,128], index: 2, kind: input, shape index: {}]   ;;  %s586_s3 = inlined_call_operand.vmem [shape: bf16[128,32], index: 3, kind: input, shape index: {}]   ;;  %s587_s4 = inlined_call_operand.hbm [shape: f32[8,32], index: 4, kind: output, shape index: {}]  }
   0x1   :  { %v19_v0 = vld [vmem:[%s583_s0] sm:$0xff]  ;;  %413 = vset.pattern.permute.xlu0 %v456_v1 }
   0x2   :  { %26 = vperm.xlu0 %413, %v19_v0  }
   0x3   :  { %9 = vsyncpa [#allocation3], 0  ;;  %v414_v2 = vld [vmem:[%s585_s2] sm:$0xff]   ;;  %v457_v3 = vmov 0.0   ;;  %vm458_vm0 = vmmov 0   ;;  %v415_v4 = vld [vmem:[%s585_s2 + $0x8] sm:$0xff]  }
   0x4   :  { %371 = vmatprep.subr.bf16.mxu0 %v457_v3  ;;  %375 = vmatprep.mubr.msk.bf16.mxu0 %vm458_vm0, %v457_v3  ;;  %v339_v5 = vld [vmem:[%s584_s1] ss:$0 sm:$0xff]  ;;  %v340_v6 = vld [vmem:[%s584_s1 + $0x1] ss:$0 sm:$0xff]  ;;  %v459_v20 = vmov 683565275  }
   0x5   :  { %372 = vmatpush3.bf16.msra.mxu0 %v414_v2  ;;  %379 = vmatprep.subr.bf16.mxu1 %v457_v3  ;;  %v460_v22 = vmov 2475754826   ;;  %v461_v25 = vmov 2131351028   ;;  %v462_v28 = vmov 2102212464  }
   0x6   :  { %373 = vmatprep.subr.bf16.mxu0 %v457_v3  ;;  %395 = vmatprep.mubr.msk.bf16.mxu1 %vm458_vm0, %v457_v3  ;;  %v463_v31 = vmov 920167782   ;;  %v464_v34 = vmov 1326507024   ;;  %vm164_vm14 = vcmask 261120   ;;  %s465_s16 = smov [#allocation2]  }
   0x7   :  { %s331_s17 = sshll.u32 %s465_s16, 4  ;;  %s332_s17 = int_to_ptr.vmem [resolvable:$true] %s331_s17 }
   0x8   :  { %s432_s18 = scalar_lea.vmem %s332_s17, 128  ;;  %p437_p1 = scmp.lt.s32.totalorder %s332_s17, %s332_s17 }
   0x9   :  { %374 = vmatpush3.bf16.msra.mxu0 %v415_v4  ;;  %p433_p0 = scmp.ne.s32.totalorder %s332_s17, %s432_s18  ;;  %p438_p2 = scmp.lt.s32.totalorder %s432_s18, %s432_s18 }
   0xb   :  { %p439_p3 = por %p438_p2, %p437_p1 }
   0xd   :  { %p440_p4 = pnand %p439_p3, %p433_p0 }
  0x81   :  { %v27_v7 = vpop.permute.xlu0 %26 }
  0x82   :  { %v33_v8 = vmul.f32 %v339_v5, %v27_v7 }
  0x84   :  { %v511_v9 = vadd.f32 %v340_v6, %v33_v8 }
  0x86   :  { %v42_v10 = vand.u32 2139095040, %v511_v9  ;;  %v39_v14 = vand.u32 2147483647, %v511_v9  ;;  %vm41_vm8 = vcmp.lt.s32.totalorder %v511_v9, 0  ;;  %vm131_vm13 = vweird.f32 %v511_v9 }
  0x88   :  { %v43_v11 = vshrl.u32 %v42_v10, 23  ;;  %v46_v17 = vand.u32 8388607, %v39_v14  ;;  %vm40_vm9 = vcmp.le.f32.partialorder %v39_v14, 0.7853982 }
  0x8a   :  { %v341_v12 = vadd.s32 4294967169, %v43_v11  ;;  %v47_v36 = vor.u32 8388608, %v46_v17 }
  0x8c   :  { %v49_v13 = vadd.s32 1, %v341_v12  ;;  %v87_v50 = vshll.u32 %v47_v36, 8 }
  0x8e   :  { %vm50_vm1 = vcmp.gt.s32.totalorder %v49_v13, 0 }
  0x8f   :  { %v51_v15 = vsel %vm50_vm1, %v49_v13, 0 }
  0x90   :  { %v53_v16 = vand.u32 31, %v51_v15  ;;  %v52_v19 = vshrl.u32 %v51_v15, 5 }
  0x92   :  { %v54_v18 = vsub.s32 32, %v53_v16  ;;  %v56_v21 = vshll.u32 %v459_v20, %v53_v16  ;;  %v59_v23 = vshll.u32 %v460_v22, %v53_v16  ;;  %v62_v27 = vshll.u32 %v461_v25, %v53_v16 }
  0x93   :  { %v65_v30 = vshll.u32 %v462_v28, %v53_v16  ;;  %v68_v33 = vshll.u32 %v463_v31, %v53_v16  ;;  %vm71_vm2 = vcmp.lt.s32.totalorder %v52_v19, 1  ;;  %vm74_vm3 = vcmp.lt.s32.totalorder %v52_v19, 4 }
  0x94   :  { %v57_v24 = vshrl.u32 %v460_v22, %v54_v18  ;;  %v60_v26 = vshrl.u32 %v461_v25, %v54_v18  ;;  %v63_v29 = vshrl.u32 %v462_v28, %v54_v18  ;;  %v66_v32 = vshrl.u32 %v463_v31, %v54_v18 }
  0x95   :  { %v69_v35 = vshrl.u32 %v464_v34, %v54_v18  ;;  %v55_v45 = vshrl.u32 %v459_v20, %v54_v18  ;;  %vm73_vm4 = vcmp.lt.s32.totalorder %v52_v19, 3  ;;  %vm72_vm5 = vcmp.lt.s32.totalorder %v52_v19, 2 }
  0x96   :  { %v58_v37 = vor.u32 %v57_v24, %v56_v21  ;;  %v61_v38 = vor.u32 %v60_v26, %v59_v23  ;;  %v64_v39 = vor.u32 %v63_v29, %v62_v27  ;;  %v67_v40 = vor.u32 %v66_v32, %v65_v30 }
  0x97   :  { %v70_v41 = vor.u32 %v69_v35, %v68_v33 }
  0x98   :  { %v76_v42 = vsel %vm74_vm3, %v64_v39, 2102212464  ;;  %v79_v43 = vsel %vm71_vm2, %v58_v37, %v61_v38  ;;  %v83_v44 = vsel %vm71_vm2, %v61_v38, %v64_v39  ;;  %v80_v46 = vsel %vm74_vm3, %v67_v40, 920167782 }
  0x99   :  { %v84_v47 = vsel %vm74_vm3, %v70_v41, 1326507024  ;;  %v81_v48 = vsel %vm73_vm4, %v64_v39, %v80_v46  ;;  %v75_v51 = vsel %vm71_vm2, %v55_v45, %v58_v37  ;;  %v77_v52 = vsel %vm73_vm4, %v61_v38, %v76_v42  ;;  %v417_v41 = vld [vmem:[%s586_s3 + $0x8] sm:$0xff]   ;;  %v419_v42 = vld [vmem:[%s586_s3 + $0x18] sm:$0xff]   ;;  %v422_v45 = vld [vmem:[%s586_s3 + $0x30] sm:$0xff]  }
  0x9a   :  { %v85_v49 = vsel %vm73_vm4, %v67_v40, %v84_v47  ;;  %v82_v53 = vsel %vm72_vm5, %v79_v43, %v81_v48  ;;  %v78_v59 = vsel %vm72_vm5, %v75_v51, %v77_v52  ;;  %v416_v40 = vld [vmem:[%s586_s3] sm:$0xff]   ;;  %v423_v46 = vld [vmem:[%s586_s3 + $0x38] sm:$0xff]  }
  0x9b   :  { %v86_v54 = vsel %vm72_vm5, %v83_v44, %v85_v49  ;;  %v520_v57 = vmul.u32.u64.low %v87_v50, %v82_v53  ;;  %v521_v58 = vmul.u32.u64.high %v87_v50, %v82_v53, %v520_v57  ;;  %v94_v61 = vmul.u32 %v87_v50, %v78_v59  ;;  %380 = vmatpush3.bf16.msra.mxu1 %v416_v40  ;;  %v420_v43 = vld [vmem:[%s586_s3 + $0x20] sm:$0xff]   ;;  %v421_v44 = vld [vmem:[%s586_s3 + $0x28] sm:$0xff]  }
  0x9c   :  { %v517_v55 = vmul.u32.u64.low %v87_v50, %v86_v54  ;;  %v518_v56 = vmul.u32.u64.high %v87_v50, %v86_v54, %v517_v55  ;;  %381 = vmatprep.subr.bf16.mxu1 %v457_v3  ;;  %v345_v47 = vld [vmem:[%s584_s1 + $0x2] ss:$0 sm:$0xff] }
  0x9d   :  { %v97_v60 = vadd.s32 1, %v521_v58 }
  0x9e   :  { %vm96_vm6 = vc.u32 %v518_v56, %v520_v57  ;;  %v95_v11 = vadd.s32 %v520_v57, %v518_v56 }
  0x9f   :  { %v98_v62 = vsel %vm96_vm6, %v97_v60, %v521_v58  ;;  %382 = vmatpush3.bf16.msra.mxu1 %v417_v41  ;;  %v350_v58 = vld [vmem:[%s584_s1 + $0x3] ss:$0 sm:$0xff] }
  0xa0   :  { %v99_v63 = vadd.s32 %v98_v62, %v94_v61  ;;  %383 = vmatprep.subr.bf16.mxu1 %v457_v3 }
  0xa2   :  { %v100_v0 = vadd.s32 536870912, %v99_v63 }
  0xa4   :  { %v101_v1 = vshrl.u32 %v100_v0, 30 }
  0xa6   :  { %v102_v2 = vshll.u32 %v101_v1, 30  ;;  %v125_v24 = vsub.s32 4, %v101_v1 }
  0xa8   :  { %v103_v4 = vsub.s32 %v99_v63, %v102_v2  ;;  %v126_v27 = vsel %vm41_vm8, %v125_v24, %v101_v1 }
  0xa9   :  { %v128_v29 = vsel %vm40_vm9, 0, %v126_v27 }
  0xaa   :  { %v105_v5 = vsub.s32 0, %v103_v4  ;;  %v132_v30 = vadd.s32 3, %v128_v29 }
  0xac   :  { %v342_v6 = vmin.u32 %v105_v5, %v103_v4  ;;  %v133_v31 = vand.u32 3, %v132_v30 }
  0xae   :  { %v107_v7 = vclz %v342_v6  ;;  %vm138_vm10 = vcmp.eq.s32.totalorder %v133_v31, 2  ;;  %vm135_vm11 = vcmp.eq.s32.totalorder %v133_v31, 0  ;;  %vm134_vm12 = vcmp.lt.s32.totalorder %v133_v31, 2 }
  0xb0   :  { %v343_v8 = vadd.s32 4294967294, %v107_v7 }
  0xb2   :  { %vm344_vm7 = vcmp.lt.s32.totalorder %v343_v8, 0 }
  0xb3   :  { %v110_v10 = vsel %vm344_vm7, 0, %v343_v8 }
  0xb4   :  { %v111_v12 = vsub.s32 32, %v110_v10  ;;  %v115_v13 = vsub.s32 4294967266, %v110_v10  ;;  %v112_v15 = vshll.u32 %v103_v4, %v110_v10 }
  0xb6   :  { %v113_v16 = vshrl.u32 %v95_v11, %v111_v12  ;;  %v116_v17 = vadd.s32 127, %v115_v13 }
  0xb8   :  { %v114_v18 = vor.u32 %v113_v16, %v112_v15  ;;  %v117_v19 = vshll.u32 %v116_v17, 23 }
  0xba   :  { %v118_v20 = vor.u32 4788187, %v117_v19  ;;  %v121_v22 = vcvt.s32.f32 %v114_v18 }
  0xbc   :  { %v119_v21 = vand.u32 2147483647, %v118_v20 }
  0xbe   :  { %v122_v23 = vmul.f32 %v121_v22, %v119_v21 }
  0xc0   :  { %v123_v25 = vxor.u32 2147483648, %v122_v23 }
  0xc2   :  { %v124_v26 = vsel %vm41_vm8, %v123_v25, %v122_v23 }
  0xc3   :  { %v127_v28 = vsel %vm40_vm9, %v511_v9, %v124_v26  ;;  %v418_v9 = vld [vmem:[%s586_s3 + $0x10] sm:$0xff]  }
  0xc4   :  { %424 = vcosq.f32 %v127_v28  ;;  %384 = vmatpush3.bf16.msra.mxu1 %v418_v9 }
  0xc5   :  { %426 = vsinq.f32 %v127_v28  ;;  %385 = vmatprep.subr.bf16.mxu1 %v457_v3 }
  0xc8   :  { %386 = vmatpush3.bf16.msra.mxu1 %v419_v42 }
  0xc9   :  { %387 = vmatprep.subr.bf16.mxu1 %v457_v3 }
  0xcc   :  { %388 = vmatpush3.bf16.msra.mxu1 %v420_v43 }
  0xcd   :  { %389 = vmatprep.subr.bf16.mxu1 %v457_v3 }
  0xce   :  { %v425_v32 = vpop.eup %424 }
  0xcf   :  { %v427_v33 = vpop.eup %426  ;;  %v139_v34 = vxor.u32 2147483648, %v425_v32 }
  0xd0   :  { %v136_v35 = vxor.u32 2147483648, %v427_v33  ;;  %390 = vmatpush3.bf16.msra.mxu1 %v421_v44 }
  0xd1   :  { %v140_v36 = vsel %vm138_vm10, %v139_v34, %v427_v33  ;;  %391 = vmatprep.subr.bf16.mxu1 %v457_v3 }
  0xd2   :  { %v137_v37 = vsel %vm135_vm11, %v425_v32, %v136_v35 }
  0xd3   :  { %v141_v14 = vsel %vm134_vm12, %v137_v37, %v140_v36 }
  0xd4   :  { %v142_v38 = vsel %vm131_vm13, nan, %v141_v14  ;;  %392 = vmatpush3.bf16.msra.mxu1 %v422_v45 }
  0xd5   :  { %v143_v39 = vpack.c.bf16 %v142_v38, %v142_v38  ;;  %393 = vmatprep.subr.bf16.mxu1 %v457_v3 }
  0xd7   :  { %376 = vmatmul.mubr.msk.bf16.vlgmr.msra.gmra.mrb[0].mxu0 %vm164_vm14, %v143_v39 }
  0xd8   :  { %394 = vmatpush3.bf16.msra.mxu1 %v423_v46 }
 0x1aa   :  { %v202_v48 = vpop.f32.mrb[0].mxu0 }
 0x1ab   :  { %v203_v49 = vadd.f32 %v345_v47, %v202_v48  ;;  %v377_v50 = vpop.f32.mrb[1].mxu0 }
 0x1ac   :  { %v205_v51 = vpop.f32.mrb[2].mxu0 }
 0x1ad   :  { %v349_v52 = vmul.f32 -1.442695, %v203_v49  ;;  %v378_v53 = vpop.f32.mrb[3].mxu0 }
 0x1af   :  { %428 = vpow2.f32 %v349_v52 }
 0x1b9   :  { %v429_v54 = vpop.eup %428 }
 0x1ba   :  { %v211_v55 = vadd.f32 1.0, %v429_v54 }
 0x1bc   :  { %430 = vrcp.f32 %v211_v55 }
 0x1c6   :  { %v431_v3 = vpop.eup %430 }
 0x1c7   :  { %v214_v56 = vmul.f32 %v431_v3, %v203_v49 }
 0x1c9   :  { %v215_v57 = vpack.c.bf16 %v214_v56, %v214_v56 }
 0x1cb   :  { %396 = vmatmul.mubr.bf16.vlgmr.msra.gmra.mrb[0].mxu1 %v215_v57 }
 0x29e   :  { %v318_v59 = vpop.f32.mrb[0].mxu1 }
 0x29f   :  { %v319_v60 = vadd.f32 %v350_v58, %v318_v59  ;;  %v397_v61 = vpop.f32.mrb[1].mxu1 }
 0x2a0   :  { %v321_v62 = vpop.f32.mrb[2].mxu1 }
 0x2a1   :  { %324 = vst.msk [vmem:[#allocation2] sm:$0xff] %vm164_vm14, %v319_v60  ;;  %v398_v63 = vpop.f32.mrb[3].mxu1 }
 0x2a2   :  { %443 = shalt.err (!%p440_p4)
}
 0x2a3   :  { %s444_s1 = scalar_lea.hbm %s587_s4, 128 }
 0x2a4   :  { %p445_p5 = scmp.ne.s32.totalorder %s587_s4, %s444_s1  ;;  %p448_p6 = scmp.lt.u32.totalorder %s444_s1, %s587_s4 }
 0x2a6   :  { %p450_p7 = pnand %p448_p6, %p445_p5 }
 0x2a8   :  { %453 = shalt.err (!%p450_p7)
}
 0x2a9   :  { %334 = dma.vmem_to_hbm [thread:$0]  %s332_s17, 128, %s587_s4, [#allocation3]  }
 0x2aa   :  { %454 = dma.done.wait [#allocation3], 128  }
 0x2ab   :  { %455 = vsyncadd [#allocation3], 4294967168 }
 0x2ac   :  { %338 = vsyncpa [#allocation3], 1 }

</bundles_post_ra>
